<compile_context>
chip_gen: v6e
topology: v6e:2x2x1
jax: 0.10.0
libtpu: 0.0.40
codegen_flags: <defaults>
</compile_context>

<pallas_src>
import jax
import jax.numpy as jnp
from jax import lax
from jax.experimental import pallas as pl
from jax.experimental.pallas import tpu as pltpu


_UNROLL_ROWS = 32          # trace-time unroll the row-DMA loops below this tile size
_S_TILE_TARGET = 256       # preferred sequence-tile size for production S


def _pick_s_tile(S):
    """Largest S tile <= _S_TILE_TARGET that evenly divides S (multiple of 8)."""
    if S <= _S_TILE_TARGET:
        return S
    for t in (256, 128, 64, 32, 16, 8):
        if S % t == 0:
            return t
    return S    # fallback: full sequence in one block


# ---------------------------------------------------------------------------
# Fused kernel: embedding row-gather (HBM table) + encoder projection + scatter
# ---------------------------------------------------------------------------
def _fused_kernel(sid_ref, ids_ref,        # scalar-prefetch (SMEM): [B], [B,S]
                  emb_hbm,                 # [V, H] embedding table, stays in HBM
                  sig_ref,                 # (1, 1, P) signal row for batch b
                  wt_ref,                  # (P, H) projection weight (resident)
                  bias_ref,                # (1, H) projection bias   (resident)
                  out_ref,                 # (1, tS, H) output VMEM block
                  proj_ref,                # (1, H) f32 scratch
                  sem):                    # DMA semaphore, shape (1,)
    b = pl.program_id(0)
    st = pl.program_id(1)
    tS = out_ref.shape[1]
    base = st * tS

    # --- SMEM scalar reads BEFORE any DMA wait (keeps sst->sld forwarding). ---
    sid = sid_ref[b]
    local = sid - base
    owns_sid = jnp.logical_and(sid >= base, sid < base + tS)

    # --- 1) Issue the tS embedding-row gathers straight into out_ref. --------
    def _issue(r):
        tok = ids_ref[b, base + r]
        pltpu.make_async_copy(emb_hbm.at[pl.ds(tok, 1), :],
                              out_ref.at[0, pl.ds(r, 1), :],
                              sem.at[0]).start()

    if tS <= _UNROLL_ROWS:
        for r in range(tS):
            _issue(r)
    else:
        def _issue_body(r, carry):
            _issue(r)
            return carry
        lax.fori_loop(0, tS, _issue_body, 0)

    # --- 2) Encoder projection for this batch row (hidden under the DMAs). ---
    @pl.when(owns_sid)
    def _():
        x = sig_ref[0]                                    # (1, P)
        proj_ref[...] = (jnp.dot(x, wt_ref[...],
                                 preferred_element_type=jnp.float32)
                         + bias_ref[...].astype(jnp.float32))

    # --- 3) Drain all gathers: combined wait on the single shared semaphore. -
    def _drain(r):
        pltpu.make_async_copy(emb_hbm.at[pl.ds(0, 1), :],
                              out_ref.at[0, pl.ds(r, 1), :],
                              sem.at[0]).wait()

    if tS <= _UNROLL_ROWS:
        for r in range(tS):
            _drain(r)
    else:
        def _drain_body(r, carry):
            _drain(r)
            return carry
        lax.fori_loop(0, tS, _drain_body, 0)

    # --- 4) Overwrite row signal_id_index[b] with the projected embedding. ---
    # (Matches PyTorch indexed assignment; assumes 0 <= sid < S.)
    @pl.when(owns_sid)
    def _():
        out_ref[0, pl.ds(local, 1), :] = proj_ref[...].astype(out_ref.dtype)


def encoder_free_embeds(signal, input_ids, signal_id_index,
                        proj_weight_t, proj_bias, emb_table):
    """Builds inputs_embeds = embed(input_ids) with row signal_id_index[b]
    replaced by Linear(signal[b].reshape(-1)).

    signal:          [B, C, T]
    input_ids:       [B, S] int32
    signal_id_index: [B]    int32
    proj_weight_t:   [P, H] (pre-transposed torch Linear weight, P = C*T)
    proj_bias:       [H]
    emb_table:       [V, H] (left in HBM; only the needed rows are DMA'd)
    returns:         [B, S, H]
    """
    B = signal.shape[0]
    P, H = proj_weight_t.shape
    S = input_ids.shape[1]

    signal_flat = signal.reshape(B, 1, P)      # (1,1,P) blocks keep layout rules happy
    bias2d = proj_bias.reshape(1, H)

    tS = _pick_s_tile(S)
    nS = S // tS
    grid = (B, nS)

    # Explicit VMEM budget: double-buffered weight/signal/bias + double-buffered
    # output block + (1,H) scratch + headroom for Mosaic internal scratch.
    isz = lambda a: jnp.dtype(a.dtype).itemsize
    resident = 2 * (P * H * isz(proj_weight_t) + H * isz(bias2d) + P * isz(signal_flat))
    per_step = 2 * (tS * H * isz(emb_table)) + H * 4
    vmem_limit = max(resident + per_step + (2 << 20), 16 << 20)
    # TODO(synk): for production P*H that exceeds ~24 MiB (v7x's 64 MiB VMEM /
    # double-buffering), K-tile the weight (stream it with emit_pipeline) instead
    # of keeping it fully VMEM-resident.

    grid_spec = pltpu.PrefetchScalarGridSpec(
        num_scalar_prefetch=2,                  # signal_id_index, input_ids -> SMEM
        grid=grid,
        in_specs=[
            pl.BlockSpec(memory_space=pl.ANY),                              # emb table (HBM)
            pl.BlockSpec((1, 1, P), lambda b, st, sid, ids: (b, 0, 0)),     # signal row
            pl.BlockSpec((P, H), lambda b, st, sid, ids: (0, 0)),           # weight (resident)
            pl.BlockSpec((1, H), lambda b, st, sid, ids: (0, 0)),           # bias   (resident)
        ],
        out_specs=pl.BlockSpec((1, tS, H), lambda b, st, sid, ids: (b, st, 0)),
        scratch_shapes=[
            pltpu.VMEM((1, H), jnp.float32),    # projected row
            pltpu.SemaphoreType.DMA((1,)),      # ONE shared gather semaphore
        ],
    )

    return pl.pallas_call(
        _fused_kernel,
        out_shape=jax.ShapeDtypeStruct((B, S, H), emb_table.dtype),
        grid_spec=grid_spec,
        compiler_params=pltpu.CompilerParams(
            dimension_semantics=("parallel", "parallel"),   # disjoint output blocks
            vmem_limit_bytes=int(vmem_limit),
        ),
    )(signal_id_index, input_ids, emb_table, signal_flat, proj_weight_t, bias2d)


# ---------------------------------------------------------------------------
# EncoderFree.forward equivalent
# ---------------------------------------------------------------------------
def encoder_free_forward(batch, params):
    """Returns batch['inputs_embeds'] (the tensor that would be fed to self.llm)."""
    inputs_embeds = encoder_free_embeds(
        batch["encoder_out"]["signal"],
        batch["input_ids"],
        batch["signal_id_index"],
        params["proj_wt"],
        params["proj_b"],
        params["emb_table"],
    )
    # TODO(synk): self.llm(batch) / generate_chat — the full LLM forward is an
    # external module with no definition here; we return inputs_embeds instead.
    return inputs_embeds


if __name__ == "__main__":
    # Small shapes consistent with the module:
    #   batch B=2, signal [B, 4, 16] -> projection_dim P=64,
    #   llm hidden_size H=128 (lane-dense), vocab V=256, seq S=8.
    B, C, T = 2, 4, 16
    P = C * T
    H = 128
    V = 256
    S = 8

    key = jax.random.PRNGKey(0)
    k_sig, k_ids, k_w, k_b, k_emb = jax.random.split(key, 5)

    signal = jax.random.normal(k_sig, (B, C, T), dtype=jnp.float32)
    input_ids = jax.random.randint(k_ids, (B, S), 0, V, dtype=jnp.int32)
    signal_id_index = jnp.array([3, 5], dtype=jnp.int32)

    # torch Linear layout is [out, in] = [H, P]; pre-transpose ONCE at load time.
    proj_w_torch = jax.random.normal(k_w, (H, P), dtype=jnp.float32) * 0.02
    params = {
        "proj_wt": jnp.asarray(proj_w_torch.T),             # [P, H], one-time copy
        "proj_b": jax.random.normal(k_b, (H,), dtype=jnp.float32) * 0.02,
        "emb_table": jax.random.normal(k_emb, (V, H), dtype=jnp.float32),
    }

    batch = {
        "encoder_out": {"signal": signal},
        "input_ids": input_ids,
        "signal_id_index": signal_id_index,
    }

    out = encoder_free_forward(batch, params)
    out = jax.block_until_ready(out)

    # Pure-JAX reference check
    sig_flat = signal.reshape(B, -1)
    proj_ref = sig_flat @ proj_w_torch.T + params["proj_b"]
    embeds_ref = params["emb_table"][input_ids]                    # [B, S, H]
    embeds_ref = embeds_ref.at[jnp.arange(B), signal_id_index, :].set(proj_ref)
    assert out.shape == (B, S, H)
    assert jnp.allclose(out, embeds_ref, atol=1e-5, rtol=1e-5)

    print("KERNEL_OK")
</pallas_src>

<mosaic_0001>
module attributes {stable_mosaic.version = 11 : i64} {
  func.func @_fused_kernel(%arg0: i32, %arg1: i32, %arg2: memref<2xi32, #tpu.memory_space<smem>>, %arg3: memref<2x8xi32, #tpu.memory_space<smem>>, %arg4: memref<256x128xf32, #tpu.memory_space<any>>, %arg5: memref<1x1x64xf32, #tpu.memory_space<vmem>>, %arg6: memref<64x128xf32, #tpu.memory_space<vmem>>, %arg7: memref<1x128xf32, #tpu.memory_space<vmem>>, %arg8: memref<1x8x128xf32, #tpu.memory_space<vmem>>, %arg9: memref<1x128xf32, #tpu.memory_space<vmem>>, %arg10: memref<1x!tpu.dma_semaphore, #tpu.memory_space<semaphore_mem>>) attributes {dimension_semantics = [#tpu.dimension_semantics<parallel>, #tpu.dimension_semantics<parallel>], iteration_bounds = array<i64: 2, 1>, scalar_prefetch = 2 : i64, scratch_operands = 2 : i64, tpu.core_type = #tpu.core_type<tc>, window_params = [{}, {transform_indices = @transform_1, window_bounds = array<i64: 1, 1, 64>}, {pipeline_mode = #tpu.pipeline_mode<synchronous>, transform_indices = @transform_2, window_bounds = array<i64: 64, 128>}, {pipeline_mode = #tpu.pipeline_mode<synchronous>, transform_indices = @transform_3, window_bounds = array<i64: 1, 128>}, {transform_indices = @transform_4, window_bounds = array<i64: 1, 8, 128>}]} {
    %c8_i32 = arith.constant 8 : i32
    %0 = arith.muli %arg1, %c8_i32 : i32
    %1 = arith.index_cast %arg0 : i32 to index
    %2 = memref.load %arg2[%1] : memref<2xi32, #tpu.memory_space<smem>>
    %3 = arith.subi %2, %0 : i32
    %4 = arith.cmpi sge, %2, %0 : i32
    %c8_i32_0 = arith.constant 8 : i32
    %5 = arith.addi %0, %c8_i32_0 : i32
    %6 = arith.cmpi slt, %2, %5 : i32
    %7 = arith.andi %4, %6 : i1
    %c0_i32 = arith.constant 0 : i32
    %8 = arith.addi %0, %c0_i32 : i32
    %9 = arith.index_cast %arg0 : i32 to index
    %10 = arith.index_cast %8 : i32 to index
    %11 = memref.load %arg3[%9, %10] : memref<2x8xi32, #tpu.memory_space<smem>>
    %c0_i32_1 = arith.constant 0 : i32
    %c0_i32_2 = arith.constant 0 : i32
    %c0_i32_3 = arith.constant 0 : i32
    %12 = tpu.memref_slice %arg4[%11, %c0_i32_3] : memref<256x128xf32, #tpu.memory_space<any>> -> memref<1x128xf32, #tpu.memory_space<any>>
    %c0_i32_4 = arith.constant 0 : i32
    %c0_i32_5 = arith.constant 0 : i32
    %13 = tpu.memref_slice %arg8[%c0_i32_1, %c0_i32_4, %c0_i32_5] : memref<1x8x128xf32, #tpu.memory_space<vmem>> -> memref<1x1x128xf32, #tpu.memory_space<vmem>>
    %14 = tpu.memref_squeeze %13 : memref<1x1x128xf32, #tpu.memory_space<vmem>> -> memref<1x128xf32, #tpu.memory_space<vmem>>
    %15 = tpu.memref_slice %arg10[%c0_i32_2] : memref<1x!tpu.dma_semaphore, #tpu.memory_space<semaphore_mem>> -> memref<1x!tpu.dma_semaphore, #tpu.memory_space<semaphore_mem>>
    %16 = tpu.memref_squeeze %15 : memref<1x!tpu.dma_semaphore, #tpu.memory_space<semaphore_mem>> -> memref<!tpu.dma_semaphore, #tpu.memory_space<semaphore_mem>>
    tpu.enqueue_dma source(%12 : memref<1x128xf32, #tpu.memory_space<any>>) target(%14 : memref<1x128xf32, #tpu.memory_space<vmem>>) target_semaphore(%16 : memref<!tpu.dma_semaphore, #tpu.memory_space<semaphore_mem>>)
    %c1_i32 = arith.constant 1 : i32
    %17 = arith.addi %0, %c1_i32 : i32
    %18 = arith.index_cast %arg0 : i32 to index
    %19 = arith.index_cast %17 : i32 to index
    %20 = memref.load %arg3[%18, %19] : memref<2x8xi32, #tpu.memory_space<smem>>
    %c0_i32_6 = arith.constant 0 : i32
    %c0_i32_7 = arith.constant 0 : i32
    %c0_i32_8 = arith.constant 0 : i32
    %21 = tpu.memref_slice %arg4[%20, %c0_i32_8] : memref<256x128xf32, #tpu.memory_space<any>> -> memref<1x128xf32, #tpu.memory_space<any>>
    %c1_i32_9 = arith.constant 1 : i32
    %c0_i32_10 = arith.constant 0 : i32
    %22 = tpu.memref_slice %arg8[%c0_i32_6, %c1_i32_9, %c0_i32_10] : memref<1x8x128xf32, #tpu.memory_space<vmem>> -> memref<1x1x128xf32, #tpu.memory_space<vmem>>
    %23 = tpu.memref_squeeze %22 : memref<1x1x128xf32, #tpu.memory_space<vmem>> -> memref<1x128xf32, #tpu.memory_space<vmem>>
    %24 = tpu.memref_slice %arg10[%c0_i32_7] : memref<1x!tpu.dma_semaphore, #tpu.memory_space<semaphore_mem>> -> memref<1x!tpu.dma_semaphore, #tpu.memory_space<semaphore_mem>>
    %25 = tpu.memref_squeeze %24 : memref<1x!tpu.dma_semaphore, #tpu.memory_space<semaphore_mem>> -> memref<!tpu.dma_semaphore, #tpu.memory_space<semaphore_mem>>
    tpu.enqueue_dma source(%21 : memref<1x128xf32, #tpu.memory_space<any>>) target(%23 : memref<1x128xf32, #tpu.memory_space<vmem>>) target_semaphore(%25 : memref<!tpu.dma_semaphore, #tpu.memory_space<semaphore_mem>>)
    %c2_i32 = arith.constant 2 : i32
    %26 = arith.addi %0, %c2_i32 : i32
    %27 = arith.index_cast %arg0 : i32 to index
    %28 = arith.index_cast %26 : i32 to index
    %29 = memref.load %arg3[%27, %28] : memref<2x8xi32, #tpu.memory_space<smem>>
    %c0_i32_11 = arith.constant 0 : i32
    %c0_i32_12 = arith.constant 0 : i32
    %c0_i32_13 = arith.constant 0 : i32
    %30 = tpu.memref_slice %arg4[%29, %c0_i32_13] : memref<256x128xf32, #tpu.memory_space<any>> -> memref<1x128xf32, #tpu.memory_space<any>>
    %c2_i32_14 = arith.constant 2 : i32
    %c0_i32_15 = arith.constant 0 : i32
    %31 = tpu.memref_slice %arg8[%c0_i32_11, %c2_i32_14, %c0_i32_15] : memref<1x8x128xf32, #tpu.memory_space<vmem>> -> memref<1x1x128xf32, #tpu.memory_space<vmem>>
    %32 = tpu.memref_squeeze %31 : memref<1x1x128xf32, #tpu.memory_space<vmem>> -> memref<1x128xf32, #tpu.memory_space<vmem>>
    %33 = tpu.memref_slice %arg10[%c0_i32_12] : memref<1x!tpu.dma_semaphore, #tpu.memory_space<semaphore_mem>> -> memref<1x!tpu.dma_semaphore, #tpu.memory_space<semaphore_mem>>
    %34 = tpu.memref_squeeze %33 : memref<1x!tpu.dma_semaphore, #tpu.memory_space<semaphore_mem>> -> memref<!tpu.dma_semaphore, #tpu.memory_space<semaphore_mem>>
    tpu.enqueue_dma source(%30 : memref<1x128xf32, #tpu.memory_space<any>>) target(%32 : memref<1x128xf32, #tpu.memory_space<vmem>>) target_semaphore(%34 : memref<!tpu.dma_semaphore, #tpu.memory_space<semaphore_mem>>)
    %c3_i32 = arith.constant 3 : i32
    %35 = arith.addi %0, %c3_i32 : i32
    %36 = arith.index_cast %arg0 : i32 to index
    %37 = arith.index_cast %35 : i32 to index
    %38 = memref.load %arg3[%36, %37] : memref<2x8xi32, #tpu.memory_space<smem>>
    %c0_i32_16 = arith.constant 0 : i32
    %c0_i32_17 = arith.constant 0 : i32
    %c0_i32_18 = arith.constant 0 : i32
    %39 = tpu.memref_slice %arg4[%38, %c0_i32_18] : memref<256x128xf32, #tpu.memory_space<any>> -> memref<1x128xf32, #tpu.memory_space<any>>
    %c3_i32_19 = arith.constant 3 : i32
    %c0_i32_20 = arith.constant 0 : i32
    %40 = tpu.memref_slice %arg8[%c0_i32_16, %c3_i32_19, %c0_i32_20] : memref<1x8x128xf32, #tpu.memory_space<vmem>> -> memref<1x1x128xf32, #tpu.memory_space<vmem>>
    %41 = tpu.memref_squeeze %40 : memref<1x1x128xf32, #tpu.memory_space<vmem>> -> memref<1x128xf32, #tpu.memory_space<vmem>>
    %42 = tpu.memref_slice %arg10[%c0_i32_17] : memref<1x!tpu.dma_semaphore, #tpu.memory_space<semaphore_mem>> -> memref<1x!tpu.dma_semaphore, #tpu.memory_space<semaphore_mem>>
    %43 = tpu.memref_squeeze %42 : memref<1x!tpu.dma_semaphore, #tpu.memory_space<semaphore_mem>> -> memref<!tpu.dma_semaphore, #tpu.memory_space<semaphore_mem>>
    tpu.enqueue_dma source(%39 : memref<1x128xf32, #tpu.memory_space<any>>) target(%41 : memref<1x128xf32, #tpu.memory_space<vmem>>) target_semaphore(%43 : memref<!tpu.dma_semaphore, #tpu.memory_space<semaphore_mem>>)
    %c4_i32 = arith.constant 4 : i32
    %44 = arith.addi %0, %c4_i32 : i32
    %45 = arith.index_cast %arg0 : i32 to index
    %46 = arith.index_cast %44 : i32 to index
    %47 = memref.load %arg3[%45, %46] : memref<2x8xi32, #tpu.memory_space<smem>>
    %c0_i32_21 = arith.constant 0 : i32
    %c0_i32_22 = arith.constant 0 : i32
    %c0_i32_23 = arith.constant 0 : i32
    %48 = tpu.memref_slice %arg4[%47, %c0_i32_23] : memref<256x128xf32, #tpu.memory_space<any>> -> memref<1x128xf32, #tpu.memory_space<any>>
    %c4_i32_24 = arith.constant 4 : i32
    %c0_i32_25 = arith.constant 0 : i32
    %49 = tpu.memref_slice %arg8[%c0_i32_21, %c4_i32_24, %c0_i32_25] : memref<1x8x128xf32, #tpu.memory_space<vmem>> -> memref<1x1x128xf32, #tpu.memory_space<vmem>>
    %50 = tpu.memref_squeeze %49 : memref<1x1x128xf32, #tpu.memory_space<vmem>> -> memref<1x128xf32, #tpu.memory_space<vmem>>
    %51 = tpu.memref_slice %arg10[%c0_i32_22] : memref<1x!tpu.dma_semaphore, #tpu.memory_space<semaphore_mem>> -> memref<1x!tpu.dma_semaphore, #tpu.memory_space<semaphore_mem>>
    %52 = tpu.memref_squeeze %51 : memref<1x!tpu.dma_semaphore, #tpu.memory_space<semaphore_mem>> -> memref<!tpu.dma_semaphore, #tpu.memory_space<semaphore_mem>>
    tpu.enqueue_dma source(%48 : memref<1x128xf32, #tpu.memory_space<any>>) target(%50 : memref<1x128xf32, #tpu.memory_space<vmem>>) target_semaphore(%52 : memref<!tpu.dma_semaphore, #tpu.memory_space<semaphore_mem>>)
    %c5_i32 = arith.constant 5 : i32
    %53 = arith.addi %0, %c5_i32 : i32
    %54 = arith.index_cast %arg0 : i32 to index
    %55 = arith.index_cast %53 : i32 to index
    %56 = memref.load %arg3[%54, %55] : memref<2x8xi32, #tpu.memory_space<smem>>
    %c0_i32_26 = arith.constant 0 : i32
    %c0_i32_27 = arith.constant 0 : i32
    %c0_i32_28 = arith.constant 0 : i32
    %57 = tpu.memref_slice %arg4[%56, %c0_i32_28] : memref<256x128xf32, #tpu.memory_space<any>> -> memref<1x128xf32, #tpu.memory_space<any>>
    %c5_i32_29 = arith.constant 5 : i32
    %c0_i32_30 = arith.constant 0 : i32
    %58 = tpu.memref_slice %arg8[%c0_i32_26, %c5_i32_29, %c0_i32_30] : memref<1x8x128xf32, #tpu.memory_space<vmem>> -> memref<1x1x128xf32, #tpu.memory_space<vmem>>
    %59 = tpu.memref_squeeze %58 : memref<1x1x128xf32, #tpu.memory_space<vmem>> -> memref<1x128xf32, #tpu.memory_space<vmem>>
    %60 = tpu.memref_slice %arg10[%c0_i32_27] : memref<1x!tpu.dma_semaphore, #tpu.memory_space<semaphore_mem>> -> memref<1x!tpu.dma_semaphore, #tpu.memory_space<semaphore_mem>>
    %61 = tpu.memref_squeeze %60 : memref<1x!tpu.dma_semaphore, #tpu.memory_space<semaphore_mem>> -> memref<!tpu.dma_semaphore, #tpu.memory_space<semaphore_mem>>
    tpu.enqueue_dma source(%57 : memref<1x128xf32, #tpu.memory_space<any>>) target(%59 : memref<1x128xf32, #tpu.memory_space<vmem>>) target_semaphore(%61 : memref<!tpu.dma_semaphore, #tpu.memory_space<semaphore_mem>>)
    %c6_i32 = arith.constant 6 : i32
    %62 = arith.addi %0, %c6_i32 : i32
    %63 = arith.index_cast %arg0 : i32 to index
    %64 = arith.index_cast %62 : i32 to index
    %65 = memref.load %arg3[%63, %64] : memref<2x8xi32, #tpu.memory_space<smem>>
    %c0_i32_31 = arith.constant 0 : i32
    %c0_i32_32 = arith.constant 0 : i32
    %c0_i32_33 = arith.constant 0 : i32
    %66 = tpu.memref_slice %arg4[%65, %c0_i32_33] : memref<256x128xf32, #tpu.memory_space<any>> -> memref<1x128xf32, #tpu.memory_space<any>>
    %c6_i32_34 = arith.constant 6 : i32
    %c0_i32_35 = arith.constant 0 : i32
    %67 = tpu.memref_slice %arg8[%c0_i32_31, %c6_i32_34, %c0_i32_35] : memref<1x8x128xf32, #tpu.memory_space<vmem>> -> memref<1x1x128xf32, #tpu.memory_space<vmem>>
    %68 = tpu.memref_squeeze %67 : memref<1x1x128xf32, #tpu.memory_space<vmem>> -> memref<1x128xf32, #tpu.memory_space<vmem>>
    %69 = tpu.memref_slice %arg10[%c0_i32_32] : memref<1x!tpu.dma_semaphore, #tpu.memory_space<semaphore_mem>> -> memref<1x!tpu.dma_semaphore, #tpu.memory_space<semaphore_mem>>
    %70 = tpu.memref_squeeze %69 : memref<1x!tpu.dma_semaphore, #tpu.memory_space<semaphore_mem>> -> memref<!tpu.dma_semaphore, #tpu.memory_space<semaphore_mem>>
    tpu.enqueue_dma source(%66 : memref<1x128xf32, #tpu.memory_space<any>>) target(%68 : memref<1x128xf32, #tpu.memory_space<vmem>>) target_semaphore(%70 : memref<!tpu.dma_semaphore, #tpu.memory_space<semaphore_mem>>)
    %c7_i32 = arith.constant 7 : i32
    %71 = arith.addi %0, %c7_i32 : i32
    %72 = arith.index_cast %arg0 : i32 to index
    %73 = arith.index_cast %71 : i32 to index
    %74 = memref.load %arg3[%72, %73] : memref<2x8xi32, #tpu.memory_space<smem>>
    %c0_i32_36 = arith.constant 0 : i32
    %c0_i32_37 = arith.constant 0 : i32
    %c0_i32_38 = arith.constant 0 : i32
    %75 = tpu.memref_slice %arg4[%74, %c0_i32_38] : memref<256x128xf32, #tpu.memory_space<any>> -> memref<1x128xf32, #tpu.memory_space<any>>
    %c7_i32_39 = arith.constant 7 : i32
    %c0_i32_40 = arith.constant 0 : i32
    %76 = tpu.memref_slice %arg8[%c0_i32_36, %c7_i32_39, %c0_i32_40] : memref<1x8x128xf32, #tpu.memory_space<vmem>> -> memref<1x1x128xf32, #tpu.memory_space<vmem>>
    %77 = tpu.memref_squeeze %76 : memref<1x1x128xf32, #tpu.memory_space<vmem>> -> memref<1x128xf32, #tpu.memory_space<vmem>>
    %78 = tpu.memref_slice %arg10[%c0_i32_37] : memref<1x!tpu.dma_semaphore, #tpu.memory_space<semaphore_mem>> -> memref<1x!tpu.dma_semaphore, #tpu.memory_space<semaphore_mem>>
    %79 = tpu.memref_squeeze %78 : memref<1x!tpu.dma_semaphore, #tpu.memory_space<semaphore_mem>> -> memref<!tpu.dma_semaphore, #tpu.memory_space<semaphore_mem>>
    tpu.enqueue_dma source(%75 : memref<1x128xf32, #tpu.memory_space<any>>) target(%77 : memref<1x128xf32, #tpu.memory_space<vmem>>) target_semaphore(%79 : memref<!tpu.dma_semaphore, #tpu.memory_space<semaphore_mem>>)
    %80 = arith.extui %7 : i1 to i32
    %c0_i32_41 = arith.constant 0 : i32
    %81 = arith.cmpi ne, %80, %c0_i32_41 : i32
    scf.if %81 {
      %c0 = arith.constant 0 : index
      %c0_91 = arith.constant 0 : index
      %c0_92 = arith.constant 0 : index
      %124 = vector.load %arg5[%c0, %c0_91, %c0_92] : memref<1x1x64xf32, #tpu.memory_space<vmem>>, vector<1x1x64xf32>
      %125 = vector.shape_cast %124 : vector<1x1x64xf32> to vector<1x64xf32>
      %c0_93 = arith.constant 0 : index
      %c0_94 = arith.constant 0 : index
      %126 = vector.load %arg6[%c0_93, %c0_94] : memref<64x128xf32, #tpu.memory_space<vmem>>, vector<64x128xf32>
      %cst = arith.constant dense<0.000000e+00> : vector<1x128xf32>
      %127 = tpu.matmul %125, %126, %cst {dimension_numbers = #tpu.dot_dimension_numbers<[1], [0], [0], [1], [0, 0, 1, 1], [], []>} : vector<1x64xf32>, vector<64x128xf32>, vector<1x128xf32> -> vector<1x128xf32>
      %c0_95 = arith.constant 0 : index
      %c0_96 = arith.constant 0 : index
      %128 = vector.load %arg7[%c0_95, %c0_96] : memref<1x128xf32, #tpu.memory_space<vmem>>, vector<1x128xf32>
      %129 = arith.addf %127, %128 : vector<1x128xf32>
      %c0_97 = arith.constant 0 : index
      %c0_98 = arith.constant 0 : index
      %130 = vector.load %arg9[%c0_97, %c0_98] : memref<1x128xf32, #tpu.memory_space<vmem>>, vector<1x128xf32>
      tpu.vector_store %arg9[%c0_97, %c0_98], %129 {strides = array<i32>} : memref<1x128xf32, #tpu.memory_space<vmem>>, vector<1x128xf32>,
    } else {
    }
    %c0_i32_42 = arith.constant 0 : i32
    %c0_i32_43 = arith.constant 0 : i32
    %c0_i32_44 = arith.constant 0 : i32
    %c0_i32_45 = arith.constant 0 : i32
    %82 = tpu.memref_slice %arg4[%c0_i32_44, %c0_i32_45] : memref<256x128xf32, #tpu.memory_space<any>> -> memref<1x128xf32, #tpu.memory_space<any>>
    %c0_i32_46 = arith.constant 0 : i32
    %c0_i32_47 = arith.constant 0 : i32
    %83 = tpu.memref_slice %arg8[%c0_i32_42, %c0_i32_46, %c0_i32_47] : memref<1x8x128xf32, #tpu.memory_space<vmem>> -> memref<1x1x128xf32, #tpu.memory_space<vmem>>
    %84 = tpu.memref_squeeze %83 : memref<1x1x128xf32, #tpu.memory_space<vmem>> -> memref<1x128xf32, #tpu.memory_space<vmem>>
    %85 = tpu.memref_slice %arg10[%c0_i32_43] : memref<1x!tpu.dma_semaphore, #tpu.memory_space<semaphore_mem>> -> memref<1x!tpu.dma_semaphore, #tpu.memory_space<semaphore_mem>>
    %86 = tpu.memref_squeeze %85 : memref<1x!tpu.dma_semaphore, #tpu.memory_space<semaphore_mem>> -> memref<!tpu.dma_semaphore, #tpu.memory_space<semaphore_mem>>
    tpu.wait_dma2 semaphore(%86 : memref<!tpu.dma_semaphore, #tpu.memory_space<semaphore_mem>>) src(%82 : memref<1x128xf32, #tpu.memory_space<any>>) dst(%84 : memref<1x128xf32, #tpu.memory_space<vmem>>)
    %c0_i32_48 = arith.constant 0 : i32
    %c0_i32_49 = arith.constant 0 : i32
    %c0_i32_50 = arith.constant 0 : i32
    %c0_i32_51 = arith.constant 0 : i32
    %87 = tpu.memref_slice %arg4[%c0_i32_50, %c0_i32_51] : memref<256x128xf32, #tpu.memory_space<any>> -> memref<1x128xf32, #tpu.memory_space<any>>
    %c1_i32_52 = arith.constant 1 : i32
    %c0_i32_53 = arith.constant 0 : i32
    %88 = tpu.memref_slice %arg8[%c0_i32_48, %c1_i32_52, %c0_i32_53] : memref<1x8x128xf32, #tpu.memory_space<vmem>> -> memref<1x1x128xf32, #tpu.memory_space<vmem>>
    %89 = tpu.memref_squeeze %88 : memref<1x1x128xf32, #tpu.memory_space<vmem>> -> memref<1x128xf32, #tpu.memory_space<vmem>>
    %90 = tpu.memref_slice %arg10[%c0_i32_49] : memref<1x!tpu.dma_semaphore, #tpu.memory_space<semaphore_mem>> -> memref<1x!tpu.dma_semaphore, #tpu.memory_space<semaphore_mem>>
    %91 = tpu.memref_squeeze %90 : memref<1x!tpu.dma_semaphore, #tpu.memory_space<semaphore_mem>> -> memref<!tpu.dma_semaphore, #tpu.memory_space<semaphore_mem>>
    tpu.wait_dma2 semaphore(%91 : memref<!tpu.dma_semaphore, #tpu.memory_space<semaphore_mem>>) src(%87 : memref<1x128xf32, #tpu.memory_space<any>>) dst(%89 : memref<1x128xf32, #tpu.memory_space<vmem>>)
    %c0_i32_54 = arith.constant 0 : i32
    %c0_i32_55 = arith.constant 0 : i32
    %c0_i32_56 = arith.constant 0 : i32
    %c0_i32_57 = arith.constant 0 : i32
    %92 = tpu.memref_slice %arg4[%c0_i32_56, %c0_i32_57] : memref<256x128xf32, #tpu.memory_space<any>> -> memref<1x128xf32, #tpu.memory_space<any>>
    %c2_i32_58 = arith.constant 2 : i32
    %c0_i32_59 = arith.constant 0 : i32
    %93 = tpu.memref_slice %arg8[%c0_i32_54, %c2_i32_58, %c0_i32_59] : memref<1x8x128xf32, #tpu.memory_space<vmem>> -> memref<1x1x128xf32, #tpu.memory_space<vmem>>
    %94 = tpu.memref_squeeze %93 : memref<1x1x128xf32, #tpu.memory_space<vmem>> -> memref<1x128xf32, #tpu.memory_space<vmem>>
    %95 = tpu.memref_slice %arg10[%c0_i32_55] : memref<1x!tpu.dma_semaphore, #tpu.memory_space<semaphore_mem>> -> memref<1x!tpu.dma_semaphore, #tpu.memory_space<semaphore_mem>>
    %96 = tpu.memref_squeeze %95 : memref<1x!tpu.dma_semaphore, #tpu.memory_space<semaphore_mem>> -> memref<!tpu.dma_semaphore, #tpu.memory_space<semaphore_mem>>
    tpu.wait_dma2 semaphore(%96 : memref<!tpu.dma_semaphore, #tpu.memory_space<semaphore_mem>>) src(%92 : memref<1x128xf32, #tpu.memory_space<any>>) dst(%94 : memref<1x128xf32, #tpu.memory_space<vmem>>)
    %c0_i32_60 = arith.constant 0 : i32
    %c0_i32_61 = arith.constant 0 : i32
    %c0_i32_62 = arith.constant 0 : i32
    %c0_i32_63 = arith.constant 0 : i32
    %97 = tpu.memref_slice %arg4[%c0_i32_62, %c0_i32_63] : memref<256x128xf32, #tpu.memory_space<any>> -> memref<1x128xf32, #tpu.memory_space<any>>
    %c3_i32_64 = arith.constant 3 : i32
    %c0_i32_65 = arith.constant 0 : i32
    %98 = tpu.memref_slice %arg8[%c0_i32_60, %c3_i32_64, %c0_i32_65] : memref<1x8x128xf32, #tpu.memory_space<vmem>> -> memref<1x1x128xf32, #tpu.memory_space<vmem>>
    %99 = tpu.memref_squeeze %98 : memref<1x1x128xf32, #tpu.memory_space<vmem>> -> memref<1x128xf32, #tpu.memory_space<vmem>>
    %100 = tpu.memref_slice %arg10[%c0_i32_61] : memref<1x!tpu.dma_semaphore, #tpu.memory_space<semaphore_mem>> -> memref<1x!tpu.dma_semaphore, #tpu.memory_space<semaphore_mem>>
    %101 = tpu.memref_squeeze %100 : memref<1x!tpu.dma_semaphore, #tpu.memory_space<semaphore_mem>> -> memref<!tpu.dma_semaphore, #tpu.memory_space<semaphore_mem>>
    tpu.wait_dma2 semaphore(%101 : memref<!tpu.dma_semaphore, #tpu.memory_space<semaphore_mem>>) src(%97 : memref<1x128xf32, #tpu.memory_space<any>>) dst(%99 : memref<1x128xf32, #tpu.memory_space<vmem>>)
    %c0_i32_66 = arith.constant 0 : i32
    %c0_i32_67 = arith.constant 0 : i32
    %c0_i32_68 = arith.constant 0 : i32
    %c0_i32_69 = arith.constant 0 : i32
    %102 = tpu.memref_slice %arg4[%c0_i32_68, %c0_i32_69] : memref<256x128xf32, #tpu.memory_space<any>> -> memref<1x128xf32, #tpu.memory_space<any>>
    %c4_i32_70 = arith.constant 4 : i32
    %c0_i32_71 = arith.constant 0 : i32
    %103 = tpu.memref_slice %arg8[%c0_i32_66, %c4_i32_70, %c0_i32_71] : memref<1x8x128xf32, #tpu.memory_space<vmem>> -> memref<1x1x128xf32, #tpu.memory_space<vmem>>
    %104 = tpu.memref_squeeze %103 : memref<1x1x128xf32, #tpu.memory_space<vmem>> -> memref<1x128xf32, #tpu.memory_space<vmem>>
    %105 = tpu.memref_slice %arg10[%c0_i32_67] : memref<1x!tpu.dma_semaphore, #tpu.memory_space<semaphore_mem>> -> memref<1x!tpu.dma_semaphore, #tpu.memory_space<semaphore_mem>>
    %106 = tpu.memref_squeeze %105 : memref<1x!tpu.dma_semaphore, #tpu.memory_space<semaphore_mem>> -> memref<!tpu.dma_semaphore, #tpu.memory_space<semaphore_mem>>
    tpu.wait_dma2 semaphore(%106 : memref<!tpu.dma_semaphore, #tpu.memory_space<semaphore_mem>>) src(%102 : memref<1x128xf32, #tpu.memory_space<any>>) dst(%104 : memref<1x128xf32, #tpu.memory_space<vmem>>)
    %c0_i32_72 = arith.constant 0 : i32
    %c0_i32_73 = arith.constant 0 : i32
    %c0_i32_74 = arith.constant 0 : i32
    %c0_i32_75 = arith.constant 0 : i32
    %107 = tpu.memref_slice %arg4[%c0_i32_74, %c0_i32_75] : memref<256x128xf32, #tpu.memory_space<any>> -> memref<1x128xf32, #tpu.memory_space<any>>
    %c5_i32_76 = arith.constant 5 : i32
    %c0_i32_77 = arith.constant 0 : i32
    %108 = tpu.memref_slice %arg8[%c0_i32_72, %c5_i32_76, %c0_i32_77] : memref<1x8x128xf32, #tpu.memory_space<vmem>> -> memref<1x1x128xf32, #tpu.memory_space<vmem>>
    %109 = tpu.memref_squeeze %108 : memref<1x1x128xf32, #tpu.memory_space<vmem>> -> memref<1x128xf32, #tpu.memory_space<vmem>>
    %110 = tpu.memref_slice %arg10[%c0_i32_73] : memref<1x!tpu.dma_semaphore, #tpu.memory_space<semaphore_mem>> -> memref<1x!tpu.dma_semaphore, #tpu.memory_space<semaphore_mem>>
    %111 = tpu.memref_squeeze %110 : memref<1x!tpu.dma_semaphore, #tpu.memory_space<semaphore_mem>> -> memref<!tpu.dma_semaphore, #tpu.memory_space<semaphore_mem>>
    tpu.wait_dma2 semaphore(%111 : memref<!tpu.dma_semaphore, #tpu.memory_space<semaphore_mem>>) src(%107 : memref<1x128xf32, #tpu.memory_space<any>>) dst(%109 : memref<1x128xf32, #tpu.memory_space<vmem>>)
    %c0_i32_78 = arith.constant 0 : i32
    %c0_i32_79 = arith.constant 0 : i32
    %c0_i32_80 = arith.constant 0 : i32
    %c0_i32_81 = arith.constant 0 : i32
    %112 = tpu.memref_slice %arg4[%c0_i32_80, %c0_i32_81] : memref<256x128xf32, #tpu.memory_space<any>> -> memref<1x128xf32, #tpu.memory_space<any>>
    %c6_i32_82 = arith.constant 6 : i32
    %c0_i32_83 = arith.constant 0 : i32
    %113 = tpu.memref_slice %arg8[%c0_i32_78, %c6_i32_82, %c0_i32_83] : memref<1x8x128xf32, #tpu.memory_space<vmem>> -> memref<1x1x128xf32, #tpu.memory_space<vmem>>
    %114 = tpu.memref_squeeze %113 : memref<1x1x128xf32, #tpu.memory_space<vmem>> -> memref<1x128xf32, #tpu.memory_space<vmem>>
    %115 = tpu.memref_slice %arg10[%c0_i32_79] : memref<1x!tpu.dma_semaphore, #tpu.memory_space<semaphore_mem>> -> memref<1x!tpu.dma_semaphore, #tpu.memory_space<semaphore_mem>>
    %116 = tpu.memref_squeeze %115 : memref<1x!tpu.dma_semaphore, #tpu.memory_space<semaphore_mem>> -> memref<!tpu.dma_semaphore, #tpu.memory_space<semaphore_mem>>
    tpu.wait_dma2 semaphore(%116 : memref<!tpu.dma_semaphore, #tpu.memory_space<semaphore_mem>>) src(%112 : memref<1x128xf32, #tpu.memory_space<any>>) dst(%114 : memref<1x128xf32, #tpu.memory_space<vmem>>)
    %c0_i32_84 = arith.constant 0 : i32
    %c0_i32_85 = arith.constant 0 : i32
    %c0_i32_86 = arith.constant 0 : i32
    %c0_i32_87 = arith.constant 0 : i32
    %117 = tpu.memref_slice %arg4[%c0_i32_86, %c0_i32_87] : memref<256x128xf32, #tpu.memory_space<any>> -> memref<1x128xf32, #tpu.memory_space<any>>
    %c7_i32_88 = arith.constant 7 : i32
    %c0_i32_89 = arith.constant 0 : i32
    %118 = tpu.memref_slice %arg8[%c0_i32_84, %c7_i32_88, %c0_i32_89] : memref<1x8x128xf32, #tpu.memory_space<vmem>> -> memref<1x1x128xf32, #tpu.memory_space<vmem>>
    %119 = tpu.memref_squeeze %118 : memref<1x1x128xf32, #tpu.memory_space<vmem>> -> memref<1x128xf32, #tpu.memory_space<vmem>>
    %120 = tpu.memref_slice %arg10[%c0_i32_85] : memref<1x!tpu.dma_semaphore, #tpu.memory_space<semaphore_mem>> -> memref<1x!tpu.dma_semaphore, #tpu.memory_space<semaphore_mem>>
    %121 = tpu.memref_squeeze %120 : memref<1x!tpu.dma_semaphore, #tpu.memory_space<semaphore_mem>> -> memref<!tpu.dma_semaphore, #tpu.memory_space<semaphore_mem>>
    tpu.wait_dma2 semaphore(%121 : memref<!tpu.dma_semaphore, #tpu.memory_space<semaphore_mem>>) src(%117 : memref<1x128xf32, #tpu.memory_space<any>>) dst(%119 : memref<1x128xf32, #tpu.memory_space<vmem>>)
    %122 = arith.extui %7 : i1 to i32
    %c0_i32_90 = arith.constant 0 : i32
    %123 = arith.cmpi ne, %122, %c0_i32_90 : i32
    scf.if %123 {
      %c0 = arith.constant 0 : index
      %c0_91 = arith.constant 0 : index
      %124 = vector.load %arg9[%c0, %c0_91] : memref<1x128xf32, #tpu.memory_space<vmem>>, vector<1x128xf32>
      %c0_92 = arith.constant 0 : index
      %125 = arith.index_cast %3 : i32 to index
      %c0_93 = arith.constant 0 : index
      %126 = vector.load %arg8[%c0_92, %125, %c0_93] : memref<1x8x128xf32, #tpu.memory_space<vmem>>, vector<1x1x128xf32>
      %127 = vector.shape_cast %126 : vector<1x1x128xf32> to vector<1x128xf32>
      %128 = vector.shape_cast %124 : vector<1x128xf32> to vector<1x1x128xf32>
      tpu.vector_store %arg8[%c0_92, %125, %c0_93], %128 {strides = array<i32>} : memref<1x8x128xf32, #tpu.memory_space<vmem>>, vector<1x1x128xf32>,
    } else {
    }
    return
  }
  func.func @transform_1(%arg0: i32, %arg1: i32, %arg2: memref<2xi32, #tpu.memory_space<smem>>, %arg3: memref<2x8xi32, #tpu.memory_space<smem>>) -> (i32, i32, i32) {
    %c0_i32 = arith.constant 0 : i32
    %c0_i32_0 = arith.constant 0 : i32
    %c0_i32_1 = arith.constant 0 : i32
    return %arg0, %c0_i32, %c0_i32_0 : i32, i32, i32
  }
  func.func @transform_2(%arg0: i32, %arg1: i32, %arg2: memref<2xi32, #tpu.memory_space<smem>>, %arg3: memref<2x8xi32, #tpu.memory_space<smem>>) -> (i32, i32) {
    %c0_i32 = arith.constant 0 : i32
    %c0_i32_0 = arith.constant 0 : i32
    %c0_i32_1 = arith.constant 0 : i32
    return %c0_i32, %c0_i32_0 : i32, i32
  }
  func.func @transform_3(%arg0: i32, %arg1: i32, %arg2: memref<2xi32, #tpu.memory_space<smem>>, %arg3: memref<2x8xi32, #tpu.memory_space<smem>>) -> (i32, i32) {
    %c0_i32 = arith.constant 0 : i32
    %c0_i32_0 = arith.constant 0 : i32
    %c0_i32_1 = arith.constant 0 : i32
    return %c0_i32, %c0_i32_0 : i32, i32
  }
  func.func @transform_4(%arg0: i32, %arg1: i32, %arg2: memref<2xi32, #tpu.memory_space<smem>>, %arg3: memref<2x8xi32, #tpu.memory_space<smem>>) -> (i32, i32, i32) {
    %c0_i32 = arith.constant 0 : i32
    %c0_i32_0 = arith.constant 0 : i32
    return %arg0, %arg1, %c0_i32 : i32, i32, i32
  }
}

</mosaic_0001>

<bundles_post_ra>
// kernel: tpu_custom_call.1
= control target key start
LH: loop header
LB: loop body
LE: loop exit
PB: predicated region body
PF: predicated region fallthrough
CT: control target
= control target key end

     0   :  { %s1049_s21 = smov [#allocation5]   ;;  %s1050_s24 = smov [#allocation6]   ;;  %s1391_s0 = inlined_call_operand.hbm [shape: s32[2], index: 0, kind: input, shape index: {}]   ;;  %s1392_s2 = inlined_call_operand.hbm [shape: f32[256,128], index: 2, kind: input, shape index: {}]   ;;  %s1393_s3 = inlined_call_operand.vmem [shape: f32[2,1,64], index: 3, kind: input, shape index: {}]   ;;  %s1394_s4 = inlined_call_operand.hbm [shape: f32[64,128], index: 4, kind: input, shape index: {}]   ;;  %s1395_s5 = inlined_call_operand.vmem [shape: f32[1,128], index: 5, kind: input, shape index: {}]   ;;  %s1396_s6 = inlined_call_operand.hbm [shape: f32[2,8,128], index: 6, kind: output, shape index: {}]   ;;  %s1397_s1 = inlined_call_operand.hbm [shape: s32[2,8], index: 1, kind: input, shape index: {}]  }
   0x1   :  { %1408 = sst [smem:[#allocation41_spill]] %s1394_s4 }
   0x2   :  { %12 = dma.hbm_to_smem %s1391_s0, 16, %s1049_s21, [#allocation4] }
   0x3   :  { %14 = dma.hbm_to_smem %s1397_s1, 32, %s1050_s24, [#allocation4] }
   0x4   :  { %1013 = dma.done.wait [#allocation4], 48 }
   0x5   :  { %1014 = vsyncadd [#allocation4], 4294967248 }
   0x6   :  { %16 = sfence }
   0x7   :  { %17 = vsyncpa [#allocation8], 0 }
   0x8   :  { %18 = vsyncpa [#allocation9], 0 }
   0x9   :  { %20 = vsyncpa [#allocation9 + $0x1], 0  ;;  %s1098_s27 = smov 0   ;;  %s1100_s28 = smov 0  }
   0xa   :  { %s1102_s29 = smov 0   ;;  %s1104_s30 = smov 0  }
   0xb   :  { %s1106_s0 = smov 0   ;;  %s1108_s7 = smov 0  }
   0xc LB: > { %1409 = sst [smem:[#allocation33_spill]] %s1027_s27  ;;  %s615_s1 = sadd.s32 4294967295, %s1047_s7   ;;  %s1047_s7 = sphi %s1108_s7, %s26_s7   ;;  %s1043_s0 = sphi %s1106_s0, %s1432_s0   ;;  %s1039_s30 = sphi %s1104_s30, %s1431_s30   ;;  %s1035_s29 = sphi %s1102_s29, %s1430_s29   ;;  %s1031_s28 = sphi %s1100_s28, %s1434_s28   ;;  %s1027_s27 = sphi %s1098_s27, %s1433_s27  }
   0xd   : > { %1410 = sst [smem:[#allocation34_spill]] %s1035_s29  ;;  %s616_s8 = sadd.s32 4294967294, %s1047_s7  }
   0xe   : > { %1411 = sst [smem:[#allocation35_spill]] %s1043_s0  ;;  %s38_s9 = sadd.s32 1, %s1043_s0 }
   0xf   : > { %1412 = sst [smem:[#allocation36_spill]] %s1047_s7  ;;  %s115_s10 = sadd.s32 1, %s1035_s29 }
  0x10   : > { %p40_p0 = scmp.ge.s32.totalorder %s38_s9, 2  ;;  %p125_p1 = scmp.ne.s32.totalorder %s1035_s29, %s1031_s28 }
  0x11   : > { %p126_p2 = scmp.eq.s32.totalorder %s615_s1, 1  ;;  %p131_p3 = scmp.ne.s32.totalorder %s1031_s28, %s1027_s27 }
  0x12   : > { %s1436_s9 = smov (%p40_p0, %s38_s9), 0  ;;  %p132_p5 = scmp.eq.s32.totalorder %s616_s8, 1 }
  0x13   : > { %1413 = sst [smem:[#allocation37_spill]] %s1436_s9  ;;  %p1138_p4 = por %p126_p2, %p125_p1 }
  0x14   : > { %s110_s12 = ssub.s32 %s1043_s0, %s1436_s9  ;;  %p617_p6 = scmp.ge.s32.totalorder %s1047_s7, 1 }
  0x15   : > { %s1414_s11 = scalar_select %p1138_p4, 1, 0 }
  0x16   : > { %p113_p7 = scmp.eq.s32.totalorder %s110_s12, 0  ;;  %p1145_p8 = por %p132_p5, %p131_p3 }
  0x17   : > { %1415 = sst [smem:[#allocation38_spill]] %s1414_s11  ;;  %p139_p9 = scmp.lt.s32.totalorder %s1047_s7, 3 }
  0x18   : > { %s1416_s13 = scalar_select %p1145_p8, 1, 0 }
  0x19   : > { %s1151_s14 = scalar_select %p113_p7, %s1035_s29, %s115_s10  }
  0x1a   : > { %1417 = sst [smem:[#allocation39_spill]] %s1416_s13  ;;  %p1153_p10 = pnand %p617_p6, %p139_p9 }
  0x1b   : > { %1418 = sst [smem:[#allocation40_spill]] %s1151_s14  ;;  %p1157_p11 = scmp.eq.s32.totalorder %s615_s1, 0 }
  0x1c   : > { %p679_p12 = pneg %p1153_p10  ;;  %s1051_s17 = smov [#allocation7]  }
  0x1d   : > { %s151_s18 = sshll.u32 %s1051_s17, 4  ;;  %s152_s18 = int_to_ptr.vmem [resolvable:$true] %s151_s18 }
  0x1e   : > { %p680_p13 = pnand %p1157_p11, %p679_p12  ;;  %s772_s19 = scalar_lea.vmem %s152_s18, 1024 }
  0x1f   : > { %p773_p1 = scmp.ne.s32.totalorder %s152_s18, %s772_s19  ;;  %p780_p5 = scmp.lt.s32.totalorder %s152_s18, %s152_s18 }
  0x20   : > { %p763_p0 = pneg %p680_p13  ;;  %p781_p6 = scmp.lt.s32.totalorder %s772_s19, %s772_s19 }
  0x22   : > { %p775_p2 = pnand %p773_p1, %p763_p0  ;;  %p782_p7 = por %p781_p6, %p780_p5 }
  0x24   : > { %p776_p3 = pneg %p775_p2 }
  0x26   : > { %p783_p9 = pnand %p782_p7, %p776_p3 }
  0x28   : > { %786 = shalt.err (!%p783_p9)
}
  0x29   : > { %s1052_s20 = smov 128   ;;  %s1053_s21 = smov 8  }
  0x2a   : > { %s1421_s4 = sld [smem:[#allocation41_spill]] }
  0x2c   : > { %176 = sbr.rel (%p1153_p10) target bundleno = 468 (0x1d4), region = 32 }
  0x30   : > { %682 = dma.hbm_to_vmem [thread:$0]  (!%p680_p13), %s1421_s4, 1024, %s152_s18, [#allocation8], %s1052_s20, %s1052_s20, %s1053_s21  }
  0x31   : > { %1016 = dma.done.wait (%p1157_p11), [#allocation8], 1024  }
  0x32   : > { %1018 = vsyncadd (%p1157_p11), [#allocation8], 4294966272  ;;  %s1398_s24 = sand.u32 1, %s1031_s28   ;;  %p198_p12 = scmp.lt.s32.totalorder %s1039_s30, 1 }
  0x33   : > { %s1177_s25 = sld [smem:[#allocation5 + %s1039_s30]]  ;;  %s622_s26 = sshll.u32 %s1398_s24, 3 }
  0x34   : > { %s1182_s1 = sshll.u32 %s1039_s30, 7  ;;  %s1438_s30 = smov (!%p198_p12, %s1039_s30), 1 }
  0x35   : > { %s216_s8 = sld [smem:[#allocation6 + %s1182_s1]]  ;;  %s1188_s10 = scalar_lea.vmem [#allocation10], %s622_s26 }
  0x36   : > { %s226_s12 = sshll.u32 %s1188_s10, 4  ;;  %s237_s18 = sadd.s32 1, %s1182_s1  ;;  %s1195_s12 = int_to_ptr.vmem [resolvable:$true] %s226_s12 }
  0x37   : > { %s241_s19 = scalar_lea.vmem %s1188_s10, 1 [#allocation10]  ;;  %s1201_s20 = sld [smem:[#allocation6 + %s237_s18]] }
  0x38   : > { %s249_s21 = sshll.u32 %s241_s19, 4  ;;  %s260_s26 = sadd.s32 2, %s1182_s1  ;;  %s1207_s21 = int_to_ptr.vmem [resolvable:$true] %s249_s21 }
  0x39   : > { %p204_p10 = scmp.ge.s32.totalorder %s1177_s25, 0  ;;  %p206_p11 = scmp.lt.s32.totalorder %s1177_s25, 8 }
  0x3a   : > { %s1213_s17 = sld [smem:[#allocation6 + %s260_s26]]  ;;  %s1218_s19 = scalar_lea.hbm %s1392_s2, 4096 }
  0x3b   : > { %p1203_p13 = pnand %p206_p11, %p204_p10  ;;  %s624_s23 = sshll.u32 %s216_s8, 4 }
  0x3c   : > { %s218_s16 = scalar_lea.hbm %s1392_s2, %s624_s23 }
  0x3d   : > { %s787_s4 = scalar_lea.hbm %s218_s16, 16  ;;  %p790_p1 = scmp.lt.s32.totalorder %s218_s16, %s1392_s2 }
  0x3e   : > { %p788_p0 = scmp.ne.s32.totalorder %s218_s16, %s787_s4  ;;  %p791_p2 = scmp.lt.s32.totalorder %s1218_s19, %s787_s4 }
  0x40   : > { %p792_p3 = por %p791_p2, %p790_p1 }
  0x42   : > { %p793_p5 = pnand %p792_p3, %p788_p0 }
  0x44   : > { %796 = shalt.err (!%p793_p5)  }
  0x45   : > { %s797_s24 = scalar_lea.vmem %s1195_s12, 16  ;;  %s1054_s8 = smov [#allocation10]  }
  0x46   : > { %p798_p6 = scmp.ne.s32.totalorder %s1195_s12, %s797_s24  ;;  %s799_s23 = sshll.u32 %s1054_s8, 4  ;;  %s1226_s23 = int_to_ptr.vmem [resolvable:$false] %s799_s23 }
  0x47   : > { %s1229_s0 = scalar_lea.vmem %s1226_s23, 256  ;;  %p802_p7 = scmp.lt.s32.totalorder %s1195_s12, %s1226_s23 }
  0x48   : > { %p803_p9 = scmp.lt.s32.totalorder %s1229_s0, %s797_s24 }
  0x4a   : > { %p804_p12 = por %p803_p9, %p802_p7 }
  0x4c   : > { %p805_p10 = pnand %p804_p12, %p798_p6 }
  0x4e   : > { %808 = shalt.err (!%p805_p10)  }
  0x4f   : > { %229 = dma.hbm_to_vmem [thread:$0]  %s218_s16, 16, %s1195_s12, [#allocation3] }
  0x50   : > { %s264_s4 = scalar_lea.vmem %s1188_s10, 2 [#allocation10]  ;;  %s283_s9 = sadd.s32 3, %s1182_s1 }
  0x51   : > { %s626_s14 = sshll.u32 %s1201_s20, 4  ;;  %s272_s26 = sshll.u32 %s264_s4, 4  ;;  %s1244_s26 = int_to_ptr.vmem [resolvable:$true] %s272_s26 }
  0x52   : > { %s240_s8 = scalar_lea.hbm %s1392_s2, %s626_s14 }
  0x53   : > { %s809_s24 = scalar_lea.hbm %s240_s8, 16  ;;  %p812_p0 = scmp.lt.s32.totalorder %s240_s8, %s1392_s2 }
  0x54   : > { %p810_p11 = scmp.ne.s32.totalorder %s240_s8, %s809_s24  ;;  %p813_p1 = scmp.lt.s32.totalorder %s1218_s19, %s809_s24 }
  0x56   : > { %p814_p2 = por %p813_p1, %p812_p0 }
  0x58   : > { %p815_p3 = pnand %p814_p2, %p810_p11 }
  0x5a   : > { %818 = shalt.err (!%p815_p3)  }
  0x5b   : > { %s819_s20 = scalar_lea.vmem %s1207_s21, 16  ;;  %p824_p6 = scmp.lt.s32.totalorder %s1207_s21, %s1226_s23 }
  0x5c   : > { %p820_p5 = scmp.ne.s32.totalorder %s1207_s21, %s819_s20  ;;  %p825_p9 = scmp.lt.s32.totalorder %s1229_s0, %s819_s20 }
  0x5e   : > { %p826_p12 = por %p825_p9, %p824_p6 }
  0x60   : > { %p827_p10 = pnand %p826_p12, %p820_p5 }
  0x62   : > { %830 = shalt.err (!%p827_p10)  }
  0x63   : > { %252 = dma.hbm_to_vmem [thread:$0]  %s240_s8, 16, %s1207_s21, [#allocation3] }
  0x64   : > { %s628_s29 = sshll.u32 %s1213_s17, 4  ;;  %s284_s13 = sld [smem:[#allocation6 + %s283_s9]] }
  0x65   : > { %s263_s14 = scalar_lea.hbm %s1392_s2, %s628_s29  ;;  %s287_s15 = scalar_lea.vmem %s1188_s10, 3 [#allocation10] }
  0x66   : > { %s831_s18 = scalar_lea.hbm %s263_s14, 16  ;;  %p834_p0 = scmp.lt.s32.totalorder %s263_s14, %s1392_s2 }
  0x67   : > { %p832_p11 = scmp.ne.s32.totalorder %s263_s14, %s831_s18  ;;  %p835_p1 = scmp.lt.s32.totalorder %s1218_s19, %s831_s18 }
  0x69   : > { %p836_p2 = por %p835_p1, %p834_p0 }
  0x6b   : > { %p837_p3 = pnand %p836_p2, %p832_p11 }
  0x6d   : > { %840 = shalt.err (!%p837_p3)  }
  0x6e   : > { %s841_s17 = scalar_lea.vmem %s1244_s26, 16  ;;  %p846_p6 = scmp.lt.s32.totalorder %s1244_s26, %s1226_s23 }
  0x6f   : > { %p842_p5 = scmp.ne.s32.totalorder %s1244_s26, %s841_s17  ;;  %p847_p9 = scmp.lt.s32.totalorder %s1229_s0, %s841_s17 }
  0x71   : > { %p848_p12 = por %p847_p9, %p846_p6 }
  0x73   : > { %p849_p10 = pnand %p848_p12, %p842_p5 }
  0x75   : > { %852 = shalt.err (!%p849_p10)  }
  0x76   : > { %275 = dma.hbm_to_vmem [thread:$0]  %s263_s14, 16, %s1244_s26, [#allocation3] }
  0x77   : > { %s295_s27 = sshll.u32 %s287_s15, 4  ;;  %s306_s21 = sadd.s32 4, %s1182_s1  ;;  %s296_s27 = int_to_ptr.vmem [resolvable:$true] %s295_s27 }
  0x78   : > { %s307_s9 = sld [smem:[#allocation6 + %s306_s21]]  ;;  %s310_s8 = scalar_lea.vmem %s1188_s10, 4 [#allocation10] }
  0x79   : > { %s329_s20 = sadd.s32 5, %s1182_s1  ;;  %s630_s29 = sshll.u32 %s284_s13, 4 }
  0x7a   : > { %s318_s16 = sshll.u32 %s310_s8, 4  ;;  %s286_s24 = scalar_lea.hbm %s1392_s2, %s630_s29  ;;  %s1277_s16 = int_to_ptr.vmem [resolvable:$true] %s318_s16 }
  0x7b   : > { %s853_s17 = scalar_lea.hbm %s286_s24, 16  ;;  %p856_p0 = scmp.lt.s32.totalorder %s286_s24, %s1392_s2 }
  0x7c   : > { %p854_p11 = scmp.ne.s32.totalorder %s286_s24, %s853_s17  ;;  %p857_p1 = scmp.lt.s32.totalorder %s1218_s19, %s853_s17 }
  0x7e   : > { %p858_p2 = por %p857_p1, %p856_p0 }
  0x80   : > { %p859_p3 = pnand %p858_p2, %p854_p11 }
  0x82   : > { %862 = shalt.err (!%p859_p3)  }
  0x83   : > { %s863_s26 = scalar_lea.vmem %s296_s27, 16  ;;  %p868_p6 = scmp.lt.s32.totalorder %s296_s27, %s1226_s23 }
  0x84   : > { %p864_p5 = scmp.ne.s32.totalorder %s296_s27, %s863_s26  ;;  %p869_p9 = scmp.lt.s32.totalorder %s1229_s0, %s863_s26 }
  0x86   : > { %p870_p12 = por %p869_p9, %p868_p6 }
  0x88   : > { %p871_p10 = pnand %p870_p12, %p864_p5 }
  0x8a   : > { %874 = shalt.err (!%p871_p10)  }
  0x8b   : > { %298 = dma.hbm_to_vmem [thread:$0]  %s286_s24, 16, %s296_s27, [#allocation3] }
  0x8c   : > { %s330_s13 = sld [smem:[#allocation6 + %s329_s20]]  ;;  %s333_s14 = scalar_lea.vmem %s1188_s10, 5 [#allocation10] }
  0x8d   : > { %s632_s7 = sshll.u32 %s307_s9, 4  ;;  %s341_s8 = sshll.u32 %s333_s14, 4  ;;  %s342_s8 = int_to_ptr.vmem [resolvable:$true] %s341_s8 }
  0x8e   : > { %s309_s21 = scalar_lea.hbm %s1392_s2, %s632_s7 }
  0x8f   : > { %s875_s29 = scalar_lea.hbm %s309_s21, 16  ;;  %p878_p0 = scmp.lt.s32.totalorder %s309_s21, %s1392_s2 }
  0x90   : > { %p876_p11 = scmp.ne.s32.totalorder %s309_s21, %s875_s29  ;;  %p879_p1 = scmp.lt.s32.totalorder %s1218_s19, %s875_s29 }
  0x92   : > { %p880_p2 = por %p879_p1, %p878_p0 }
  0x94   : > { %p881_p3 = pnand %p880_p2, %p876_p11 }
  0x96   : > { %884 = shalt.err (!%p881_p3)  }
  0x97   : > { %s885_s27 = scalar_lea.vmem %s1277_s16, 16  ;;  %p890_p6 = scmp.lt.s32.totalorder %s1277_s16, %s1226_s23 }
  0x98   : > { %p886_p5 = scmp.ne.s32.totalorder %s1277_s16, %s885_s27  ;;  %p891_p9 = scmp.lt.s32.totalorder %s1229_s0, %s885_s27 }
  0x9a   : > { %p892_p12 = por %p891_p9, %p890_p6 }
  0x9c   : > { %p893_p10 = pnand %p892_p12, %p886_p5 }
  0x9e   : > { %896 = shalt.err (!%p893_p10)  }
  0x9f   : > { %321 = dma.hbm_to_vmem [thread:$0]  %s309_s21, 16, %s1277_s16, [#allocation3] }
  0xa0   : > { %s352_s9 = sadd.s32 6, %s1182_s1  ;;  %s356_s20 = scalar_lea.vmem %s1188_s10, 6 [#allocation10] }
  0xa1   : > { %s353_s24 = sld [smem:[#allocation6 + %s352_s9]]  ;;  %s634_s17 = sshll.u32 %s330_s13, 4 }
  0xa2   : > { %s364_s26 = sshll.u32 %s356_s20, 4  ;;  %s332_s11 = scalar_lea.hbm %s1392_s2, %s634_s17  ;;  %s365_s26 = int_to_ptr.vmem [resolvable:$true] %s364_s26 }
  0xa3   : > { %s375_s15 = sadd.s32 7, %s1182_s1  ;;  %s897_s29 = scalar_lea.hbm %s332_s11, 16 }
  0xa4   : > { %p898_p11 = scmp.ne.s32.totalorder %s332_s11, %s897_s29  ;;  %p900_p0 = scmp.lt.s32.totalorder %s332_s11, %s1392_s2 }
  0xa5   : > { %p901_p1 = scmp.lt.s32.totalorder %s1218_s19, %s897_s29 }
  0xa7   : > { %p902_p2 = por %p901_p1, %p900_p0 }
  0xa9   : > { %p903_p3 = pnand %p902_p2, %p898_p11 }
  0xab   : > { %906 = shalt.err (!%p903_p3)  }
  0xac   : > { %s907_s16 = scalar_lea.vmem %s342_s8, 16  ;;  %p912_p6 = scmp.lt.s32.totalorder %s342_s8, %s1226_s23 }
  0xad   : > { %p908_p5 = scmp.ne.s32.totalorder %s342_s8, %s907_s16  ;;  %p913_p9 = scmp.lt.s32.totalorder %s1229_s0, %s907_s16 }
  0xaf   : > { %p914_p12 = por %p913_p9, %p912_p6 }
  0xb1   : > { %p915_p10 = pnand %p914_p12, %p908_p5 }
  0xb3   : > { %918 = shalt.err (!%p915_p10)  }
  0xb4   : > { %344 = dma.hbm_to_vmem [thread:$0]  %s332_s11, 16, %s342_s8, [#allocation3] }
  0xb5   : > { %s376_s13 = sld [smem:[#allocation6 + %s375_s15]]  ;;  %s379_s21 = scalar_lea.vmem %s1188_s10, 7 [#allocation10] }
  0xb6   : > { %s636_s27 = sshll.u32 %s353_s24, 4  ;;  %s387_s9 = sshll.u32 %s379_s21, 4  ;;  %s388_s9 = int_to_ptr.vmem [resolvable:$true] %s387_s9 }
  0xb7   : > { %s355_s14 = scalar_lea.hbm %s1392_s2, %s636_s27 }
  0xb8   : > { %s919_s7 = scalar_lea.hbm %s355_s14, 16  ;;  %p922_p0 = scmp.lt.s32.totalorder %s355_s14, %s1392_s2 }
  0xb9   : > { %p920_p11 = scmp.ne.s32.totalorder %s355_s14, %s919_s7  ;;  %p923_p1 = scmp.lt.s32.totalorder %s1218_s19, %s919_s7 }
  0xbb   : > { %p924_p2 = por %p923_p1, %p922_p0 }
  0xbd   : > { %p925_p3 = pnand %p924_p2, %p920_p11 }
  0xbf   : > { %928 = shalt.err (!%p925_p3)  }
  0xc0   : > { %s929_s8 = scalar_lea.vmem %s365_s26, 16  ;;  %p934_p6 = scmp.lt.s32.totalorder %s365_s26, %s1226_s23 }
  0xc1   : > { %p930_p5 = scmp.ne.s32.totalorder %s365_s26, %s929_s8  ;;  %p935_p9 = scmp.lt.s32.totalorder %s1229_s0, %s929_s8 }
  0xc3   : > { %p936_p12 = por %p935_p9, %p934_p6 }
  0xc5   : > { %p937_p10 = pnand %p936_p12, %p930_p5 }
  0xc7   : > { %940 = shalt.err (!%p937_p10)  }
  0xc8   : > { %367 = dma.hbm_to_vmem [thread:$0]  %s355_s14, 16, %s365_s26, [#allocation3] }
  0xc9   : > { %s638_s24 = sshll.u32 %s376_s13, 4 }
  0xca   : > { %s378_s18 = scalar_lea.hbm %s1392_s2, %s638_s24 }
  0xcb   : > { %s941_s16 = scalar_lea.hbm %s378_s18, 16  ;;  %p944_p0 = scmp.lt.s32.totalorder %s378_s18, %s1392_s2 }
  0xcc   : > { %p942_p11 = scmp.ne.s32.totalorder %s378_s18, %s941_s16  ;;  %p945_p1 = scmp.lt.s32.totalorder %s1218_s19, %s941_s16 }
  0xce   : > { %p946_p2 = por %p945_p1, %p944_p0 }
  0xd0   : > { %p947_p3 = pnand %p946_p2, %p942_p11 }
  0xd2   : > { %950 = shalt.err (!%p947_p3)  }
  0xd3   : > { %s951_s20 = scalar_lea.vmem %s388_s9, 16  ;;  %p956_p6 = scmp.lt.s32.totalorder %s388_s9, %s1226_s23 }
  0xd4   : > { %p952_p5 = scmp.ne.s32.totalorder %s388_s9, %s951_s20  ;;  %p957_p9 = scmp.lt.s32.totalorder %s1229_s0, %s951_s20 }
  0xd6   : > { %p958_p12 = por %p957_p9, %p956_p6 }
  0xd8   : > { %p959_p10 = pnand %p958_p12, %p952_p5 }
  0xda   : > { %962 = shalt.err (!%p959_p10)  }
  0xdb   : > { %390 = dma.hbm_to_vmem [thread:$0]  %s378_s18, 16, %s388_s9, [#allocation3] }
  0xdc   : > { %392 = sbr.rel (%p1203_p13) target bundleno = 438 (0x1b6), region = 72  ;;  %s1423_s13 = scalar_lea.vmem (!%p1203_p13), %s1393_s3, %s1438_s30 }
  0xe1   : > { %v401_v0 = vld [vmem:[#allocation7 + $0x38] sm:$0xff]  ;;  %v1055_v1 = vmov 0.0   ;;  %v400_v2 = vld [vmem:[#allocation7 + $0x30] sm:$0xff]  ;;  %vm1056_vm0 = vmmov 0   ;;  %v399_v3 = vld [vmem:[#allocation7 + $0x28] sm:$0xff]  ;;  %vm403_vm1 = vcmask 523264  }
  0xe2   : > { %654 = vmatprep.subr.mxu0 %v1055_v1  ;;  %670 = vmatprep.mubr.msk.f32.mxu0 %vm1056_vm0, %v1055_v1  ;;  %v398_v4 = vld [vmem:[#allocation7 + $0x20] sm:$0xff]  ;;  %v397_v5 = vld [vmem:[#allocation7 + $0x18] sm:$0xff]  ;;  %v396_v6 = vld [vmem:[#allocation7 + $0x10] sm:$0xff] }
  0xe3   : > { %655 = vmatpush3.msra.mxu0 %v401_v0  ;;  %v395_v7 = vld [vmem:[#allocation7 + $0x8] sm:$0xff]  ;;  %v394_v8 = vld [vmem:[#allocation7] sm:$0xff]  ;;  %v393_v9 = vld [vmem:[%s1423_s13] sm:$0x1] }
  0xe4   : > { %656 = vmatprep.subr.mxu0 %v1055_v1  ;;  %v402_v10 = vld [vmem:[%s1395_s5] sm:$0x1] }
  0xe5   : > { %657 = vmatpush3.msra.mxu0 %v400_v2 }
  0xe6   : > { %658 = vmatprep.subr.mxu0 %v1055_v1 }
  0xe7   : > { %659 = vmatpush3.msra.mxu0 %v399_v3 }
  0xe8   : > { %660 = vmatprep.subr.mxu0 %v1055_v1 }
  0xe9   : > { %661 = vmatpush3.msra.mxu0 %v398_v4 }
  0xea   : > { %662 = vmatprep.subr.mxu0 %v1055_v1 }
  0xeb   : > { %663 = vmatpush3.msra.mxu0 %v397_v5 }
  0xec   : > { %664 = vmatprep.subr.mxu0 %v1055_v1 }
  0xed   : > { %665 = vmatpush3.msra.mxu0 %v396_v6 }
  0xee   : > { %666 = vmatprep.subr.mxu0 %v1055_v1 }
  0xef   : > { %667 = vmatpush3.msra.mxu0 %v395_v7 }
  0xf0   : > { %668 = vmatprep.subr.mxu0 %v1055_v1 }
  0xf1   : > { %669 = vmatpush3.msra.mxu0 %v394_v8 }
  0xf2   : > { %671 = vmatmul.mubr.msk.f32.vlgmr.msra.gmra.mxu0 %vm403_vm1, %v393_v9 }
 0x1b2   : > { %v473_v11 = vpop.f32.mrf.mxu0 }
 0x1b3   : > { %v474_v12 = vadd.f32 %v473_v11, %v402_v10 }
 0x1b4   : > { %v672_v13 = vpop.f32.mrf.mxu0 }
 0x1b5   : > { %477 = vst [vmem:[#allocation2] sm:$0x1] %v474_v12 }
 0x1b6 PF: > { %1019 = dma.done.wait [#allocation3], 128 }
 0x1b7   : > { %1020 = vsyncadd [#allocation3], 4294967168  ;;  %496 = sbr.rel (%p1203_p13) target bundleno = 446 (0x1be), region = 76  ;;  %s498_s30 = scalar_lea.vmem (!%p1203_p13), %s1188_s10, %s1177_s25 [#allocation10] }
 0x1bc   : > { %v497_v14 = vld [vmem:[#allocation2] sm:$0x1] }
 0x1bd   : > { %499 = vst [vmem:[%s498_s30] sm:$0x1] %v497_v14 }
 0x1be PF: > { %s513_s4 = scalar_lea.hbm %s1396_s6, %s1182_s1  ;;  %s1425_s22 = sand.u32 1, %s1031_s28  }
 0x1bf   : > { %s501_s8 = scalar_lea.sflag [#allocation9], %s1425_s22  ;;  %s963_s24 = scalar_lea.vmem %s1195_s12, 128 }
 0x1c0   : > { %p964_p13 = scmp.ne.s32.totalorder %s1195_s12, %s963_s24  ;;  %p971_p1 = scmp.lt.s32.totalorder %s1229_s0, %s963_s24 }
 0x1c2   : > { %p965_p11 = pnand %p964_p13, %p1138_p4  ;;  %p972_p2 = por %p971_p1, %p802_p7 }
 0x1c4   : > { %p966_p0 = pneg %p965_p11 }
 0x1c6   : > { %p973_p3 = pnand %p972_p2, %p966_p0 }
 0x1c8   : > { %976 = shalt.err (!%p973_p3)
}
 0x1c9   : > { %s977_s25 = scalar_lea.hbm %s513_s4, 128  ;;  %s981_s11 = scalar_lea.hbm %s1396_s6, 256 }
 0x1ca   : > { %p978_p5 = scmp.ne.s32.totalorder %s513_s4, %s977_s25  ;;  %p982_p12 = scmp.lt.s32.totalorder %s513_s4, %s1396_s6 }
 0x1cb   : > { %p983_p10 = scmp.lt.s32.totalorder %s981_s11, %s977_s25 }
 0x1cc   : > { %p979_p6 = pnand %p978_p5, %p1138_p4 }
 0x1cd   : > { %p984_p13 = por %p983_p10, %p982_p12 }
 0x1ce   : > { %p980_p9 = pneg %p979_p6 }
 0x1d0   : > { %p985_p11 = pnand %p984_p13, %p980_p9 }
 0x1d2   : > { %988 = shalt.err (!%p985_p11)
}
 0x1d3   : > { %677 = dma.vmem_to_hbm [thread:$0]  (%p1138_p4), %s1195_s12, 128, %s513_s4, %s501_s8  }
 0x1d4 PF: > { %s1426_s23 = sld [smem:[#allocation36_spill]] }
 0x1d5   : > { %s1427_s0 = sld [smem:[#allocation33_spill]] }
 0x1da   : > { %p689_p7 = scmp.ge.s32.totalorder %s1426_s23, 2 }
 0x1db   : > { %s527_s21 = sand.u32 1, %s1427_s0  }
 0x1dc   : > { %p684_p0 = pnand %p689_p7, %p1145_p8  ;;  %s528_s27 = scalar_lea.sflag [#allocation9], %s527_s21 }
 0x1de   : > { %p685_p1 = pneg %p684_p0 }
 0x1e0   : > { %1022 = dma.done.wait (%p685_p1), %s528_s27, 128  }
 0x1e1   : > { %1024 = vsyncadd (%p685_p1), %s528_s27, 4294967168  ;;  %s26_s7 = sadd.s32 1, %s1426_s23   ;;  %s1429_s20 = sld [smem:[#allocation34_spill]] }
 0x1e2   : > { %p23_p2 = scmp.ge.s32.totalorder %s26_s7, 4   ;;  %s1430_s29 = sld [smem:[#allocation40_spill]] }
 0x1e3   : > { %s1431_s30 = sld [smem:[#allocation35_spill]]  ;;  %s1433_s27 = smov %s1031_s28 }
 0x1e4   : > { %s1432_s0 = sld [smem:[#allocation37_spill]]  ;;  %25 = sbr.rel (!%p23_p2) target bundleno = 12 (0xc), region = 128 }
 0x1e7   : > { %s1434_s28 = smov %s1429_s20 }
 0x1e9   :  { %533 = vsyncpa [#allocation8], 1 }
 0x1ea   :  { %535 = vsyncpa [#allocation8 + $0x1], 1 }
 0x1eb   :  { %536 = vsyncpa [#allocation9], 1 }
 0x1ec   :  { %538 = vsyncpa [#allocation9 + $0x1], 1 }
 0x1ed   :  { %539 = vsyncmov [#allocation3] }
 0x1f0   :  { %s540_s12 = vpop.sfrf %539 }
 0x1f1   :  { %p644_p4 = scmp.ne.s32.totalorder %s540_s12, 0 }
 0x1f3   :  { %544 = shalt.err (%p644_p4)  }

</bundles_post_ra>
